<compile_context>
chip_gen: v5e
topology: v5e:2x2
jax: 0.10.0
libtpu: 0.0.40
codegen_flags: <defaults>
</compile_context>

<pallas_src>
import functools

import jax
import jax.numpy as jnp
from jax.experimental import pallas as pl
from jax.experimental.pallas import tpu as pltpu


def _classifier_kernel(zt_ref, w1t_ref, b1_ref, w2_ref, b2_ref, o_ref):
    # Hidden layer, transposed: (32, D) @ (D, TB) -> (32, TB); batch on lanes.
    # Operands are streamed as bf16 but upcast to f32 for the dot
    # (F32 x F32 = F32 is supported everywhere; kernel is HBM-bound anyway).
    w1t = w1t_ref[...].astype(jnp.float32)
    zt = zt_ref[...].astype(jnp.float32)
    h = jnp.dot(w1t, zt, preferred_element_type=jnp.float32)      # (32, TB)
    h = jnp.maximum(h + b1_ref[...], 0.0)                         # bias over lanes; ReLU
    # Output layer (out_features = 1): VPU multiply by the W2 column + sublane
    # reduce on the XLU, then add the SMEM scalar bias.
    logits = jnp.sum(h * w2_ref[...], axis=0, keepdims=True) + b2_ref[0]   # (1, TB)
    # Sigmoid (exp on EUP), lane-dense (1, TB) store.
    o_ref[...] = jax.nn.sigmoid(logits).astype(o_ref.dtype)


def _round_up(x: int, m: int) -> int:
    return ((x + m - 1) // m) * m


@functools.partial(jax.jit, static_argnames=("block_b",))
def classifier_forward(z, w1, b1, w2, b2, *, block_b: int = 4096):
    """Forward pass matching the PyTorch module.

    z:  (B, D) float32   — fair representation
    w1: (D, 32), b1: (1, 32), w2: (32, 1), b2: (1, 1)  (weights pre-transposed
        to (in, out) so the math is z @ W1 + b1, identical to x @ W.T + b).
    Returns (B, 1) float32 probabilities.
    """
    B, D = z.shape
    H = w1.shape[1]

    # Batch tile: multiple of 128 (lane width); large to amortize per-step
    # overhead. VMEM never binds for these shapes (even on v7x's 64 MiB):
    # a (D, TB) bf16 tile at TB=4096 is only 128 KiB.
    TB = min(block_b, _round_up(B, 128))
    Bp = _round_up(B, TB)

    # Layout plumbing: batch -> lanes, bf16 HBM stream, f32 bias/epilogue.
    zt = z.astype(jnp.bfloat16).T                       # (D, B)
    if Bp != B:
        zt = jnp.pad(zt, ((0, 0), (0, Bp - B)))         # pad batch (sliced off below)
    w1t = w1.astype(jnp.bfloat16).T                     # (H, D)
    b1c = b1.reshape(H, 1).astype(jnp.float32)          # (H, 1)
    w2c = w2.reshape(H, 1).astype(jnp.float32)          # (H, 1)
    b2s = b2.reshape(1).astype(jnp.float32)             # (1,) scalar -> SMEM

    out_t = pl.pallas_call(
        _classifier_kernel,
        out_shape=jax.ShapeDtypeStruct((1, Bp), jnp.float32),
        grid=(Bp // TB,),
        in_specs=[
            pl.BlockSpec((D, TB), lambda i: (0, i)),    # z^T, tiled along batch/lanes
            pl.BlockSpec((H, D), lambda i: (0, 0)),     # W1^T, VMEM-resident
            pl.BlockSpec((H, 1), lambda i: (0, 0)),     # b1 column, VMEM-resident
            pl.BlockSpec((H, 1), lambda i: (0, 0)),     # W2 column, VMEM-resident
            pl.BlockSpec(memory_space=pltpu.MemorySpace.SMEM),  # b2 scalar
        ],
        out_specs=pl.BlockSpec((1, TB), lambda i: (0, i)),      # lane-dense output
        compiler_params=pltpu.CompilerParams(
            dimension_semantics=("parallel",),          # shard batch across TCs (v7x)
        ),
    )(zt, w1t, b1c, w2c, b2s)

    return out_t[0, :B].reshape(B, 1)


def init_params(latent_dim: int, key):
    """Deterministic init matching nn.Linear shapes (stored as (in, out))."""
    k1, k2, k3, k4 = jax.random.split(key, 4)
    hidden = 32
    # PyTorch default init: U(-1/sqrt(fan_in), 1/sqrt(fan_in))
    lim1 = 1.0 / jnp.sqrt(jnp.float32(latent_dim))
    lim2 = 1.0 / jnp.sqrt(jnp.float32(hidden))
    w1 = jax.random.uniform(k1, (latent_dim, hidden), jnp.float32, -lim1, lim1)
    b1 = jax.random.uniform(k2, (1, hidden), jnp.float32, -lim1, lim1)
    w2 = jax.random.uniform(k3, (hidden, 1), jnp.float32, -lim2, lim2)
    b2 = jax.random.uniform(k4, (1, 1), jnp.float32, -lim2, lim2)
    return w1, b1, w2, b2


if __name__ == "__main__":
    key = jax.random.PRNGKey(0)
    k_z, k_p = jax.random.split(key)

    batch, latent_dim = 8, 16
    z = jax.random.normal(k_z, (batch, latent_dim), jnp.float32)
    w1, b1, w2, b2 = init_params(latent_dim, k_p)

    out = classifier_forward(z, w1, b1, w2, b2)
    out = jax.block_until_ready(out)
    assert out.shape == (batch, 1)

    # Reference 1: f32 math over the bf16-rounded inputs (matches the kernel's
    # bf16 HBM stream + f32 compute; only accumulation-order differences left).
    z_r = z.astype(jnp.bfloat16).astype(jnp.float32)
    w1_r = w1.astype(jnp.bfloat16).astype(jnp.float32)
    h_ref = jnp.maximum(z_r @ w1_r + b1, 0.0)
    ref_rounded = jax.nn.sigmoid(h_ref @ w2 + b2)
    assert jnp.allclose(out, ref_rounded, atol=1e-4, rtol=1e-4)

    # Reference 2: full-f32 PyTorch-equivalent math (loose tol for bf16 stream).
    ref_f32 = jax.nn.sigmoid(jnp.maximum(z @ w1 + b1, 0.0) @ w2 + b2)
    assert jnp.allclose(out, ref_f32, atol=1e-2)

    print("KERNEL_OK")
</pallas_src>

<mosaic_0001>
module attributes {stable_mosaic.version = 11 : i64} {
  func.func @_classifier_kernel(%arg0: i32, %arg1: memref<16x128xbf16, #tpu.memory_space<vmem>>, %arg2: memref<32x16xbf16, #tpu.memory_space<vmem>>, %arg3: memref<32x1xf32, #tpu.memory_space<vmem>>, %arg4: memref<32x1xf32, #tpu.memory_space<vmem>>, %arg5: memref<1xf32, #tpu.memory_space<smem>>, %arg6: memref<1x128xf32, #tpu.memory_space<vmem>>) attributes {dimension_semantics = [#tpu.dimension_semantics<parallel>], iteration_bounds = array<i64: 1>, scalar_prefetch = 0 : i64, scratch_operands = 0 : i64, tpu.core_type = #tpu.core_type<tc>, window_params = [{transform_indices = @transform_0, window_bounds = array<i64: 16, 128>}, {pipeline_mode = #tpu.pipeline_mode<synchronous>, transform_indices = @transform_1, window_bounds = array<i64: 32, 16>}, {pipeline_mode = #tpu.pipeline_mode<synchronous>, transform_indices = @transform_2, window_bounds = array<i64: 32, 1>}, {pipeline_mode = #tpu.pipeline_mode<synchronous>, transform_indices = @transform_3, window_bounds = array<i64: 32, 1>}, {transform_indices = @transform_4, window_bounds = array<i64: 1>}, {transform_indices = @transform_5, window_bounds = array<i64: 1, 128>}]} {
    %c0 = arith.constant 0 : index
    %c0_0 = arith.constant 0 : index
    %0 = vector.load %arg2[%c0, %c0_0] : memref<32x16xbf16, #tpu.memory_space<vmem>>, vector<32x16xbf16>
    %1 = arith.extf %0 : vector<32x16xbf16> to vector<32x16xf32>
    %c0_1 = arith.constant 0 : index
    %c0_2 = arith.constant 0 : index
    %2 = vector.load %arg1[%c0_1, %c0_2] : memref<16x128xbf16, #tpu.memory_space<vmem>>, vector<16x128xbf16>
    %3 = arith.extf %2 : vector<16x128xbf16> to vector<16x128xf32>
    %cst = arith.constant dense<0.000000e+00> : vector<32x128xf32>
    %4 = tpu.matmul %1, %3, %cst {dimension_numbers = #tpu.dot_dimension_numbers<[1], [0], [0], [1], [0, 0, 1, 1], [], []>} : vector<32x16xf32>, vector<16x128xf32>, vector<32x128xf32> -> vector<32x128xf32>
    %c0_3 = arith.constant 0 : index
    %c0_4 = arith.constant 0 : index
    %5 = vector.load %arg3[%c0_3, %c0_4] : memref<32x1xf32, #tpu.memory_space<vmem>>, vector<32x1xf32>
    %6 = vector.broadcast %5 : vector<32x1xf32> to vector<32x128xf32>
    %7 = arith.addf %4, %6 : vector<32x128xf32>
    %cst_5 = arith.constant 0.000000e+00 : f32
    %8 = vector.broadcast %cst_5 : f32 to vector<32x128xf32>
    %9 = arith.maximumf %7, %8 : vector<32x128xf32>
    %c0_6 = arith.constant 0 : index
    %c0_7 = arith.constant 0 : index
    %10 = vector.load %arg4[%c0_6, %c0_7] : memref<32x1xf32, #tpu.memory_space<vmem>>, vector<32x1xf32>
    %11 = vector.broadcast %10 : vector<32x1xf32> to vector<32x128xf32>
    %12 = arith.mulf %9, %11 : vector<32x128xf32>
    %cst_8 = arith.constant dense<0.000000e+00> : vector<128xf32>
    %13 = vector.multi_reduction <add>, %12, %cst_8 [0] : vector<32x128xf32> to vector<128xf32>
    %14 = vector.shape_cast %13 : vector<128xf32> to vector<1x128xf32>
    %c0_9 = arith.constant 0 : index
    %15 = memref.load %arg5[%c0_9] : memref<1xf32, #tpu.memory_space<smem>>
    %16 = vector.broadcast %15 : f32 to vector<1x128xf32>
    %17 = arith.addf %14, %16 : vector<1x128xf32>
    %18 = arith.negf %17 : vector<1x128xf32>
    %19 = math.exp %18 : vector<1x128xf32>
    %cst_10 = arith.constant 1.000000e+00 : f32
    %20 = vector.broadcast %cst_10 : f32 to vector<1x128xf32>
    %21 = arith.addf %20, %19 : vector<1x128xf32>
    %22 = arith.divf %20, %21 : vector<1x128xf32>
    %c0_11 = arith.constant 0 : index
    %c0_12 = arith.constant 0 : index
    %23 = vector.load %arg6[%c0_11, %c0_12] : memref<1x128xf32, #tpu.memory_space<vmem>>, vector<1x128xf32>
    tpu.vector_store %arg6[%c0_11, %c0_12], %22 {strides = array<i32>} : memref<1x128xf32, #tpu.memory_space<vmem>>, vector<1x128xf32>,
    return
  }
  func.func @transform_0(%arg0: i32) -> (i32, i32) {
    %c0_i32 = arith.constant 0 : i32
    %c0_i32_0 = arith.constant 0 : i32
    return %c0_i32, %arg0 : i32, i32
  }
  func.func @transform_1(%arg0: i32) -> (i32, i32) {
    %c0_i32 = arith.constant 0 : i32
    %c0_i32_0 = arith.constant 0 : i32
    %c0_i32_1 = arith.constant 0 : i32
    return %c0_i32, %c0_i32_0 : i32, i32
  }
  func.func @transform_2(%arg0: i32) -> (i32, i32) {
    %c0_i32 = arith.constant 0 : i32
    %c0_i32_0 = arith.constant 0 : i32
    %c0_i32_1 = arith.constant 0 : i32
    return %c0_i32, %c0_i32_0 : i32, i32
  }
  func.func @transform_3(%arg0: i32) -> (i32, i32) {
    %c0_i32 = arith.constant 0 : i32
    %c0_i32_0 = arith.constant 0 : i32
    %c0_i32_1 = arith.constant 0 : i32
    return %c0_i32, %c0_i32_0 : i32, i32
  }
  func.func @transform_4(%arg0: i32) -> i32 {
    %c0_i32 = arith.constant 0 : i32
    %c0_i32_0 = arith.constant 0 : i32
    return %c0_i32 : i32
  }
  func.func @transform_5(%arg0: i32) -> (i32, i32) {
    %c0_i32 = arith.constant 0 : i32
    %c0_i32_0 = arith.constant 0 : i32
    return %c0_i32, %arg0 : i32, i32
  }
}

</mosaic_0001>

<bundles_post_ra>
// kernel: classifier_forward.1
= control target key start
LH: loop header
LB: loop body
LE: loop exit
PB: predicated region body
PF: predicated region fallthrough
CT: control target
= control target key end

     0   :  { %v199_v0 = vmov 0   ;;  %vm57_vm0 = vcmask 130048   ;;  %s269_s2 = inlined_call_operand.vmem [shape: f32[32,1], index: 2, kind: input, shape index: {}]   ;;  %s270_s0 = inlined_call_operand.vmem [shape: bf16[16,128], index: 0, kind: input, shape index: {}]   ;;  %s271_s1 = inlined_call_operand.vmem [shape: bf16[32,16], index: 1, kind: input, shape index: {}]   ;;  %s272_s3 = inlined_call_operand.vmem [shape: f32[32,1], index: 3, kind: input, shape index: {}]   ;;  %s273_s4 = inlined_call_operand.<no memory space> [shape: f32[1], index: 4, kind: input, shape index: {}]   ;;  %s274_s5 = inlined_call_operand.vmem [shape: f32[1,128], index: 5, kind: output, shape index: {}]  }
   0x1   :  { %193 = vset.pattern.permute.xlu1 %v199_v0  ;;  %192 = vset.pattern.permute.xlu0 %v199_v0  ;;  %v35_v1 = vld [vmem:[%s269_s2 + $0x10] sm:$0xff]  ;;  %v33_v2 = vld [vmem:[%s269_s2] sm:$0xff]  ;;  %v184_v7 = vld [vmem:[%s271_s1 + $0x8] sm:$0xff]   ;;  %v141_v50 = vstv %s273_s4 }
   0x2   :  { %v181_v3 = vld [vmem:[%s270_s0] sm:$0xff]   ;;  %49 = vperm.xlu1 %193, %v35_v1   ;;  %39 = vperm.xlu0 %192, %v33_v2   ;;  %v178_v10 = vunpack.c.l.bf16 %v184_v7  ;;  %v179_v11 = vunpack.c.h.bf16 %v184_v7  ;;  %v36_v12 = vld [vmem:[%s269_s2 + $0x18] sm:$0xff]  ;;  %v34_v13 = vld [vmem:[%s269_s2 + $0x8] sm:$0xff] }
   0x3   :  { %v183_v4 = vunpack.c.h.bf16 %v181_v3  ;;  %v182_v5 = vunpack.c.l.bf16 %v181_v3  ;;  %v173_v6 = vld [vmem:[%s271_s1] sm:$0xff]   ;;  %194 = vset.pattern.permute.xlu2 %v199_v0  ;;  %v106_v15 = vld [vmem:[%s272_s3 + $0x18] sm:$0xff]  ;;  %v105_v16 = vld [vmem:[%s272_s3 + $0x10] sm:$0xff] }
   0x4   :  { %v174_v8 = vunpack.c.l.bf16 %v173_v6  ;;  %v175_v9 = vunpack.c.h.bf16 %v173_v6  ;;  %v103_v14 = vld [vmem:[%s272_s3] sm:$0xff]  ;;  %v104_v17 = vld [vmem:[%s272_s3 + $0x8] sm:$0xff] }
   0x5   :  { %84 = vmatpush.msra.mxu0 %v183_v4  ;;  %185 = vmatpush.msra.mxu1 %v183_v4 }
   0x6   :  { %186 = vmatpush.msra.mxu2 %v183_v4  ;;  %187 = vmatpush.msra.mxu3 %v183_v4 }
   0x7   :  { %85 = vmatpush.msra.mxu0 %v182_v5  ;;  %188 = vmatpush.msra.mxu1 %v182_v5 }
   0x8   :  { %189 = vmatpush.msra.mxu2 %v182_v5  ;;  %190 = vmatpush.msra.mxu3 %v182_v5 }
   0x9   :  { %167 = vmatmul.msk.f32.vlgmr.msra.gmra.mxu0 %vm57_vm0, %v174_v8  ;;  %168 = vmatmul.msk.f32.vlgmr.msra.gmra.mxu1 %vm57_vm0, %v175_v9 }
   0xa   :  { %169 = vmatmul.msk.f32.vlgmr.msra.gmra.mxu2 %vm57_vm0, %v178_v10  ;;  %170 = vmatmul.msk.f32.vlgmr.msra.gmra.mxu3 %vm57_vm0, %v179_v11 }
   0xb   :  { %54 = vperm.xlu1 %193, %v36_v12   ;;  %44 = vperm.xlu0 %192, %v34_v13  }
   0xc   :  { %109 = vperm.xlu2 %194, %v103_v14  }
  0x13   :  { %124 = vperm.xlu1 %193, %v106_v15   ;;  %119 = vperm.xlu0 %192, %v105_v16  }
  0x14   :  { %114 = vperm.xlu2 %194, %v104_v17  }
  0x66   :  { %v110_v20 = vpop.permute.xlu2 %109 }
  0x6e   :  { %v115_v29 = vpop.permute.xlu2 %114 }
  0x74   :  { %v40_v18 = vpop.permute.xlu0 %39  ;;  %v50_v19 = vpop.permute.xlu1 %49 }
  0x7d   :  { %v45_v21 = vpop.permute.xlu0 %44  ;;  %v55_v26 = vpop.permute.xlu1 %54 }
  0x85   :  { %v120_v38 = vpop.permute.xlu0 %119  ;;  %v125_v41 = vpop.permute.xlu1 %124 }
  0x86   :  { %v87_v22 = vpop.f32.mrf.mxu0  ;;  %v90_v23 = vpop.f32.mrf.mxu1 }
  0x87   :  { %v88_v24 = vadd.f32 %v87_v22, %v40_v18  ;;  %v91_v25 = vadd.f32 %v90_v23, %v45_v21 }
  0x89   :  { %v99_v27 = vmax.f32 %v88_v24, 0.0  ;;  %v100_v28 = vmax.f32 %v91_v25, 0.0 }
  0x8b   :  { %v127_v32 = vmul.f32 %v110_v20, %v99_v27  ;;  %v128_v33 = vmul.f32 %v115_v29, %v100_v28 }
  0x8d   :  { %v93_v30 = vpop.f32.mrf.mxu2  ;;  %v96_v31 = vpop.f32.mrf.mxu3  ;;  %v131_v39 = vadd.f32 %v128_v33, %v127_v32 }
  0x8e   :  { %v94_v34 = vadd.f32 %v93_v30, %v50_v19  ;;  %v97_v35 = vadd.f32 %v96_v31, %v55_v26 }
  0x90   :  { %v101_v36 = vmax.f32 %v94_v34, 0.0  ;;  %v102_v37 = vmax.f32 %v97_v35, 0.0 }
  0x92   :  { %v129_v40 = vmul.f32 %v120_v38, %v101_v36  ;;  %v130_v43 = vmul.f32 %v125_v41, %v102_v37 }
  0x94   :  { %v132_v42 = vadd.f32 %v131_v39, %v129_v40 }
  0x96   :  { %v133_v44 = vadd.f32 %v132_v42, %v130_v43 }
  0x98   :  { %v134_v45 = vrot.slane %v133_v44, 4 }
  0x9a   :  { %v135_v46 = vadd.f32 %v134_v45, %v133_v44 }
  0x9c   :  { %v136_v47 = vrot.slane %v135_v46, 2 }
  0x9e   :  { %v137_v48 = vadd.f32 %v136_v47, %v135_v46 }
  0xa0   :  { %v138_v49 = vrot.slane %v137_v48, 1 }
  0xa2   :  { %v139_v51 = vadd.f32 %v138_v49, %v137_v48 }
  0xa4   :  { %v142_v52 = vadd.f32 %v141_v50, %v139_v51 }
  0xa6   :  { %v171_v53 = vmul.f32 -1.442695, %v142_v52 }
  0xa8   :  { %195 = vpow2.f32 %v171_v53 }
  0xae   :  { %v196_v54 = vpop.eup %195 }
  0xaf   :  { %v146_v55 = vadd.f32 1.0, %v196_v54 }
  0xb1   :  { %197 = vrcp.f32 %v146_v55  ;;  %v158_v59 = vand.u32 2147483648, %v146_v55  ;;  %v156_v61 = vand.u32 2147483647, %v146_v55  ;;  %vm152_vm2 = vweird.f32 %v146_v55 }
  0xb3   :  { %v159_v63 = vor.u32 1.1754944e-38, %v158_v59  ;;  %vm157_vm4 = vcmp.eq.f32.partialorder %v156_v61, 8.507059e+37 }
  0xb7   :  { %v198_v56 = vpop.eup %197 }
  0xb8   :  { %v148_v57 = vmul.f32 %v198_v56, %v146_v55  ;;  %vm153_vm1 = vweird.f32 %v198_v56 }
  0xb9   :  { %vm154_vm3 = vmor %vm152_vm2, %vm153_vm1 }
  0xba   :  { %v149_v58 = vsub.f32 1.0, %v148_v57 }
  0xbc   :  { %v150_v60 = vmul.f32 %v198_v56, %v149_v58 }
  0xbe   :  { %v151_v62 = vadd.f32 %v198_v56, %v150_v60 }
  0xc0   :  { %v155_v0 = vsel %vm154_vm3, %v198_v56, %v151_v62 }
  0xc1   :  { %v160_v1 = vsel %vm157_vm4, %v159_v63, %v155_v0 }
  0xc2   :  { %162 = vst [vmem:[%s274_s5] sm:$0x1] %v160_v1 }

</bundles_post_ra>
